<compile_context>
chip_gen: v7x
topology: tpu7x:2x2x1
jax: 0.10.0
libtpu: 0.0.40
codegen_flags: <defaults>
</compile_context>

<pallas_src>
import functools
import numpy as np
import jax
import jax.numpy as jnp
from jax.experimental import pallas as pl
from jax.experimental.pallas import tpu as pltpu


def _round_up(x, m):
    return (x + m - 1) // m * m


# ----------------------- deterministic parameter setup -----------------------

def _hz_to_mel(f):
    return 2595.0 * np.log10(1.0 + f / 700.0)


def _mel_to_hz(m):
    return 700.0 * (10.0 ** (m / 2595.0) - 1.0)


def melscale_fbanks(n_freqs, f_min, f_max, n_mels, sample_rate):
    """torchaudio-style (htk, norm=None) triangular mel filterbank, (n_freqs, n_mels)."""
    all_freqs = np.linspace(0.0, sample_rate // 2, n_freqs)
    m_pts = np.linspace(_hz_to_mel(f_min), _hz_to_mel(f_max), n_mels + 2)
    f_pts = _mel_to_hz(m_pts)
    f_diff = f_pts[1:] - f_pts[:-1]                     # (n_mels+1,)
    slopes = f_pts[None, :] - all_freqs[:, None]        # (n_freqs, n_mels+2)
    down = (-1.0 * slopes[:, :-2]) / f_diff[:-1]
    up = slopes[:, 2:] / f_diff[1:]
    return np.maximum(0.0, np.minimum(down, up)).astype(np.float32)


# --------------------------------- kernel ------------------------------------

def melspec_kernel(framesT_ref, dftT_ref, fbT_ref, out_ref, *, power, n_freqs_pad):
    """One (batch, time-tile) grid step.

    framesT_ref: (1, n_fft, TILE_T)      bf16  time-transposed frames
    dftT_ref:    (2*n_freqs_pad, n_fft)  bf16  fused [cos ; -sin] real-DFT matrix
    fbT_ref:     (n_mels, n_freqs_pad)   bf16  mel filterbank (transposed)
    out_ref:     (1, n_mels, TILE_T)     f32
    """
    fr = framesT_ref[0]                                                  # (n_fft, T_t)
    # Single fused DFT matmul: bf16 inputs, f32 accumulation in the MXU.
    ri = jnp.dot(dftT_ref[...], fr, preferred_element_type=jnp.float32)  # (2F, T_t)
    re = ri[:n_freqs_pad]
    im = ri[n_freqs_pad:]
    # Elementwise magnitude math stays in f32 (v5e has no bf16 VPU/EUP).
    pspec = re * re + im * im                                            # power spectrum
    # Matches the torch reference: power==1 -> magnitude, power==2 -> power spectrum.
    spec = jnp.sqrt(pspec) if power == 1 else pspec
    # Mel projection on the bf16 MXU path (f32 accumulate), already in
    # (n_mels, time) layout -> no output transpose, lane-dense stores.
    out_ref[0] = jnp.dot(fbT_ref[...], spec.astype(jnp.bfloat16),
                         preferred_element_type=jnp.float32)


# -------------------------------- module -------------------------------------

class MelSpec:
    def __init__(self, n_fft=2048, hop_length=1024, n_mels=128, sample_rate=16000,
                 power=1, f_min=40, f_max=7600, pad_end=True, center=True,
                 max_tile_t=512):
        self.n_fft = n_fft
        self.hop_length = hop_length
        self.n_mels = n_mels
        self.sample_rate = sample_rate
        self.power = power
        self.pad_end = pad_end
        self.center = center
        # 512 amortizes per-grid-step overhead on v6e/v7x and is still fine on v5e
        # (whose per-tile MXU time dwarfs the ~0.35us step overhead anyway).
        self.max_tile_t = max_tile_t          # keep a multiple of 128

        n_freqs = n_fft // 2 + 1
        # Sublane (8) alignment is all the DFT-matmul M axis needs; padding to 128
        # would waste ~10% of the dominant matmul's rows (1025 -> 1152 vs 1032).
        n_freqs_pad = _round_up(n_freqs, 8)
        self.n_freqs = n_freqs
        self.n_freqs_pad = n_freqs_pad

        # Mel filterbank, stored transposed (n_mels, n_freqs_pad) in bf16 so the
        # mel projection uses the fast bf16 MXU path; pad columns are zero.
        fb = melscale_fbanks(n_freqs, f_min, f_max, n_mels, sample_rate)
        fb_t = np.zeros((n_mels, n_freqs_pad), np.float32)
        fb_t[:, :n_freqs] = fb.T
        self.fb_t = jnp.asarray(fb_t, dtype=jnp.bfloat16)

        # Fused real-DFT matrix [cos ; -sin], rectangular window (torch.stft
        # window=None), shape (2*n_freqs_pad, n_fft); pad rows are zero so they
        # add no energy.  bf16 weights: half VMEM, fast MXU path, f32 accumulate.
        k = np.arange(n_freqs)[:, None].astype(np.float64)
        n = np.arange(n_fft)[None, :].astype(np.float64)
        ang = 2.0 * np.pi * k * n / n_fft
        dft_t = np.zeros((2 * n_freqs_pad, n_fft), np.float32)
        dft_t[:n_freqs] = np.cos(ang)
        dft_t[n_freqs_pad:n_freqs_pad + n_freqs] = -np.sin(ang)
        # TODO(synk): v7x-only fp8 (e4m3) DFT weights could ~2x the dominant matmul;
        # left at bf16 pending an accuracy check against the f32 torch reference.
        self.dft_t = jnp.asarray(dft_t, dtype=jnp.bfloat16)

    def __call__(self, audio):
        audio = audio.astype(jnp.float32)
        B, L = audio.shape

        # pad_end so (L - n_fft) % hop == 0 (torch F.pad constant zeros),
        # applied before the center pad, exactly as in the torch module.
        if self.pad_end:
            remainder = (L - self.n_fft) % self.hop_length
            pad = 0 if remainder == 0 else self.hop_length - remainder
            if pad:
                audio = jnp.pad(audio, ((0, 0), (0, pad)))
            L += pad

        # center=True: torch.stft reflect-pads n_fft // 2 on each side.
        if self.center:
            half = self.n_fft // 2
            audio = jnp.pad(audio, ((0, 0), (half, half)), mode="reflect")
            L += 2 * half

        T = 1 + (L - self.n_fft) // self.hop_length

        # Frame in (n_fft, time) layout so the kernel output is already (n_mels, time).
        if self.n_fft % self.hop_length == 0 and L % self.hop_length == 0:
            # Cheap reshape + concat framing (no XLA gather).
            r = self.n_fft // self.hop_length
            chunks_t = jnp.transpose(
                audio.reshape(B, L // self.hop_length, self.hop_length), (0, 2, 1))
            frames_t = jnp.concatenate(
                [chunks_t[:, :, j:j + T] for j in range(r)], axis=1)   # (B, n_fft, T)
        else:
            idx = (np.arange(self.n_fft)[:, None]
                   + np.arange(T)[None, :] * self.hop_length)          # (n_fft, T)
            frames_t = jnp.take(audio, jnp.asarray(idx), axis=1)
        frames_t = frames_t.astype(jnp.bfloat16)

        # Time tiling: lane-dense (multiple of 128) tiles, bounded VMEM independent
        # of audio length, and the next tile's DMA overlaps the current tile's MXU work.
        if T <= self.max_tile_t:
            tile_t = _round_up(T, 128)        # single tile, never < 128 lanes
        else:
            tile_t = self.max_tile_t          # multiple of 128 -> unmasked vst
        T_pad = _round_up(T, tile_t)
        if T_pad != T:
            frames_t = jnp.pad(frames_t, ((0, 0), (0, 0), (0, T_pad - T)))

        n_fft, n_mels, n_freqs_pad = self.n_fft, self.n_mels, self.n_freqs_pad

        # Explicit VMEM budget.  Sized for the worst case (constants double-buffered,
        # i.e. the no-pipeline_mode fallback); capped at 48 MiB so Mosaic scratch /
        # semaphores keep headroom against v7x's 64 MiB/TC physical VMEM.
        const_bytes = 2 * n_freqs_pad * n_fft * 2 + n_mels * n_freqs_pad * 2
        stream_bytes = n_fft * tile_t * 2 + n_mels * tile_t * 4
        interm_bytes = (2 * n_freqs_pad * tile_t * 4       # ri (f32)
                        + 3 * n_freqs_pad * tile_t * 4     # squares / pspec / sqrt temps
                        + n_freqs_pad * tile_t * 2)        # bf16 spec for the mel matmul
        vmem_limit = min(max(2 * (const_bytes + stream_bytes) + interm_bytes + (6 << 20),
                             24 << 20),
                         48 << 20)

        kernel = functools.partial(melspec_kernel, power=self.power,
                                   n_freqs_pad=n_freqs_pad)

        def call(single_buffer_consts):
            # Grid-invariant constants (constant index_map -> fetched once);
            # Buffered(1) stops them from being double-buffered in VMEM.
            const_kw = ({"pipeline_mode": pl.Buffered(1)}
                        if single_buffer_consts else {})
            in_specs = [
                pl.BlockSpec((1, n_fft, tile_t), lambda b, t: (b, 0, t)),
                pl.BlockSpec((2 * n_freqs_pad, n_fft), lambda b, t: (0, 0), **const_kw),
                pl.BlockSpec((n_mels, n_freqs_pad), lambda b, t: (0, 0), **const_kw),
            ]
            return pl.pallas_call(
                kernel,
                out_shape=jax.ShapeDtypeStruct((B, n_mels, T_pad), jnp.float32),
                grid=(B, T_pad // tile_t),
                in_specs=in_specs,
                out_specs=pl.BlockSpec((1, n_mels, tile_t), lambda b, t: (b, 0, t)),
                compiler_params=pltpu.CompilerParams(
                    dimension_semantics=("parallel", "parallel"),
                    vmem_limit_bytes=int(vmem_limit)),
            )(frames_t, self.dft_t, self.fb_t)

        try:
            out = call(True)
        except Exception:
            # TODO(synk): drop this fallback once pl.Buffered(1) single-buffering of
            # grid-invariant pallas_call inputs is confirmed on the target jax build.
            out = call(False)

        # (batch, n_mels, n_frames), dropping the padded time columns.
        return out[:, :, :T]


# --------------------------------- demo --------------------------------------

if __name__ == "__main__":
    # Small-but-consistent configuration of the module.
    n_fft, hop, n_mels = 64, 32, 16
    mel = MelSpec(n_fft=n_fft, hop_length=hop, n_mels=n_mels, sample_rate=16000,
                  power=1, f_min=40, f_max=7600, pad_end=True, center=True)

    key = jax.random.PRNGKey(0)
    audio = jax.random.normal(key, (2, 256), dtype=jnp.float32)   # (batch, samples)

    out = mel(audio)
    out = jax.block_until_ready(out)
    assert out.shape == (2, n_mels, 1 + 256 // hop), out.shape
    assert bool(jnp.all(jnp.isfinite(out)))
    print("KERNEL_OK")
</pallas_src>

<mosaic_0001>
module attributes {stable_mosaic.version = 11 : i64} {
  func.func @melspec_kernel(%arg0: i32, %arg1: i32, %arg2: memref<1x64x128xbf16, #tpu.memory_space<vmem>>, %arg3: memref<80x64xbf16, #tpu.memory_space<vmem>>, %arg4: memref<16x40xbf16, #tpu.memory_space<vmem>>, %arg5: memref<1x16x128xf32, #tpu.memory_space<vmem>>) attributes {dimension_semantics = [#tpu.dimension_semantics<parallel>, #tpu.dimension_semantics<parallel>], iteration_bounds = array<i64: 2, 1>, scalar_prefetch = 0 : i64, scratch_operands = 0 : i64, tpu.core_type = #tpu.core_type<tc>, window_params = [{transform_indices = @transform_0, window_bounds = array<i64: 1, 64, 128>}, {pipeline_mode = #tpu.pipeline_mode<synchronous>, transform_indices = @transform_1, window_bounds = array<i64: 80, 64>}, {pipeline_mode = #tpu.pipeline_mode<synchronous>, transform_indices = @transform_2, window_bounds = array<i64: 16, 40>}, {transform_indices = @transform_3, window_bounds = array<i64: 1, 16, 128>}]} {
    %c0 = arith.constant 0 : index
    %c0_0 = arith.constant 0 : index
    %c0_1 = arith.constant 0 : index
    %0 = vector.load %arg2[%c0, %c0_0, %c0_1] : memref<1x64x128xbf16, #tpu.memory_space<vmem>>, vector<1x64x128xbf16>
    %1 = vector.shape_cast %0 : vector<1x64x128xbf16> to vector<64x128xbf16>
    %c0_2 = arith.constant 0 : index
    %c0_3 = arith.constant 0 : index
    %2 = vector.load %arg3[%c0_2, %c0_3] : memref<80x64xbf16, #tpu.memory_space<vmem>>, vector<80x64xbf16>
    %cst = arith.constant dense<0.000000e+00> : vector<80x128xf32>
    %3 = tpu.matmul %2, %1, %cst {dimension_numbers = #tpu.dot_dimension_numbers<[1], [0], [0], [1], [0, 0, 1, 1], [], []>} : vector<80x64xbf16>, vector<64x128xbf16>, vector<80x128xf32> -> vector<80x128xf32>
    %4 = vector.extract_strided_slice %3 {offsets = [0, 0], sizes = [40, 128], strides = [1, 1]} : vector<80x128xf32> to vector<40x128xf32>
    %5 = vector.extract_strided_slice %3 {offsets = [40, 0], sizes = [40, 128], strides = [1, 1]} : vector<80x128xf32> to vector<40x128xf32>
    %6 = arith.mulf %4, %4 : vector<40x128xf32>
    %7 = arith.mulf %5, %5 : vector<40x128xf32>
    %8 = arith.addf %6, %7 : vector<40x128xf32>
    %9 = math.sqrt %8 : vector<40x128xf32>
    %c0_4 = arith.constant 0 : index
    %c0_5 = arith.constant 0 : index
    %10 = vector.load %arg4[%c0_4, %c0_5] : memref<16x40xbf16, #tpu.memory_space<vmem>>, vector<16x40xbf16>
    %11 = arith.truncf %9 : vector<40x128xf32> to vector<40x128xbf16>
    %cst_6 = arith.constant dense<0.000000e+00> : vector<16x128xf32>
    %12 = tpu.matmul %10, %11, %cst_6 {dimension_numbers = #tpu.dot_dimension_numbers<[1], [0], [0], [1], [0, 0, 1, 1], [], []>} : vector<16x40xbf16>, vector<40x128xbf16>, vector<16x128xf32> -> vector<16x128xf32>
    %c0_7 = arith.constant 0 : index
    %c0_8 = arith.constant 0 : index
    %c0_9 = arith.constant 0 : index
    %13 = vector.load %arg5[%c0_7, %c0_8, %c0_9] : memref<1x16x128xf32, #tpu.memory_space<vmem>>, vector<1x16x128xf32>
    %14 = vector.shape_cast %13 : vector<1x16x128xf32> to vector<16x128xf32>
    %15 = vector.shape_cast %12 : vector<16x128xf32> to vector<1x16x128xf32>
    tpu.vector_store %arg5[%c0_7, %c0_8, %c0_9], %15 {strides = array<i32>} : memref<1x16x128xf32, #tpu.memory_space<vmem>>, vector<1x16x128xf32>,
    return
  }
  func.func @transform_0(%arg0: i32, %arg1: i32) -> (i32, i32, i32) {
    %c0_i32 = arith.constant 0 : i32
    %c0_i32_0 = arith.constant 0 : i32
    return %arg0, %c0_i32, %arg1 : i32, i32, i32
  }
  func.func @transform_1(%arg0: i32, %arg1: i32) -> (i32, i32) {
    %c0_i32 = arith.constant 0 : i32
    %c0_i32_0 = arith.constant 0 : i32
    %c0_i32_1 = arith.constant 0 : i32
    return %c0_i32, %c0_i32_0 : i32, i32
  }
  func.func @transform_2(%arg0: i32, %arg1: i32) -> (i32, i32) {
    %c0_i32 = arith.constant 0 : i32
    %c0_i32_0 = arith.constant 0 : i32
    %c0_i32_1 = arith.constant 0 : i32
    return %c0_i32, %c0_i32_0 : i32, i32
  }
  func.func @transform_3(%arg0: i32, %arg1: i32) -> (i32, i32, i32) {
    %c0_i32 = arith.constant 0 : i32
    %c0_i32_0 = arith.constant 0 : i32
    return %arg0, %c0_i32, %arg1 : i32, i32, i32
  }
}

module attributes {stable_mosaic.version = 11 : i64} {
  func.func @melspec_kernel(%arg0: i32, %arg1: i32, %arg2: memref<1x64x128xbf16, #tpu.memory_space<vmem>>, %arg3: memref<80x64xbf16, #tpu.memory_space<vmem>>, %arg4: memref<16x40xbf16, #tpu.memory_space<vmem>>, %arg5: memref<1x16x128xf32, #tpu.memory_space<vmem>>) attributes {dimension_semantics = [#tpu.dimension_semantics<parallel>, #tpu.dimension_semantics<parallel>], iteration_bounds = array<i64: 2, 1>, scalar_prefetch = 0 : i64, scratch_operands = 0 : i64, tpu.core_type = #tpu.core_type<tc>, window_params = [{transform_indices = @transform_0, window_bounds = array<i64: 1, 64, 128>}, {pipeline_mode = #tpu.pipeline_mode<synchronous>, transform_indices = @transform_1, window_bounds = array<i64: 80, 64>}, {pipeline_mode = #tpu.pipeline_mode<synchronous>, transform_indices = @transform_2, window_bounds = array<i64: 16, 40>}, {transform_indices = @transform_3, window_bounds = array<i64: 1, 16, 128>}]} {
    %c0 = arith.constant 0 : index
    %c0_0 = arith.constant 0 : index
    %c0_1 = arith.constant 0 : index
    %0 = vector.load %arg2[%c0, %c0_0, %c0_1] : memref<1x64x128xbf16, #tpu.memory_space<vmem>>, vector<1x64x128xbf16>
    %1 = vector.shape_cast %0 : vector<1x64x128xbf16> to vector<64x128xbf16>
    %c0_2 = arith.constant 0 : index
    %c0_3 = arith.constant 0 : index
    %2 = vector.load %arg3[%c0_2, %c0_3] : memref<80x64xbf16, #tpu.memory_space<vmem>>, vector<80x64xbf16>
    %cst = arith.constant dense<0.000000e+00> : vector<80x128xf32>
    %3 = tpu.matmul %2, %1, %cst {dimension_numbers = #tpu.dot_dimension_numbers<[1], [0], [0], [1], [0, 0, 1, 1], [], []>} : vector<80x64xbf16>, vector<64x128xbf16>, vector<80x128xf32> -> vector<80x128xf32>
    %4 = vector.extract_strided_slice %3 {offsets = [0, 0], sizes = [40, 128], strides = [1, 1]} : vector<80x128xf32> to vector<40x128xf32>
    %5 = vector.extract_strided_slice %3 {offsets = [40, 0], sizes = [40, 128], strides = [1, 1]} : vector<80x128xf32> to vector<40x128xf32>
    %6 = arith.mulf %4, %4 : vector<40x128xf32>
    %7 = arith.mulf %5, %5 : vector<40x128xf32>
    %8 = arith.addf %6, %7 : vector<40x128xf32>
    %9 = math.sqrt %8 : vector<40x128xf32>
    %c0_4 = arith.constant 0 : index
    %c0_5 = arith.constant 0 : index
    %10 = vector.load %arg4[%c0_4, %c0_5] : memref<16x40xbf16, #tpu.memory_space<vmem>>, vector<16x40xbf16>
    %11 = arith.truncf %9 : vector<40x128xf32> to vector<40x128xbf16>
    %cst_6 = arith.constant dense<0.000000e+00> : vector<16x128xf32>
    %12 = tpu.matmul %10, %11, %cst_6 {dimension_numbers = #tpu.dot_dimension_numbers<[1], [0], [0], [1], [0, 0, 1, 1], [], []>} : vector<16x40xbf16>, vector<40x128xbf16>, vector<16x128xf32> -> vector<16x128xf32>
    %c0_7 = arith.constant 0 : index
    %c0_8 = arith.constant 0 : index
    %c0_9 = arith.constant 0 : index
    %13 = vector.load %arg5[%c0_7, %c0_8, %c0_9] : memref<1x16x128xf32, #tpu.memory_space<vmem>>, vector<1x16x128xf32>
    %14 = vector.shape_cast %13 : vector<1x16x128xf32> to vector<16x128xf32>
    %15 = vector.shape_cast %12 : vector<16x128xf32> to vector<1x16x128xf32>
    tpu.vector_store %arg5[%c0_7, %c0_8, %c0_9], %15 {strides = array<i32>} : memref<1x16x128xf32, #tpu.memory_space<vmem>>, vector<1x16x128xf32>,
    return
  }
  func.func @transform_0(%arg0: i32, %arg1: i32) -> (i32, i32, i32) {
    %c0_i32 = arith.constant 0 : i32
    %c0_i32_0 = arith.constant 0 : i32
    return %arg0, %c0_i32, %arg1 : i32, i32, i32
  }
  func.func @transform_1(%arg0: i32, %arg1: i32) -> (i32, i32) {
    %c0_i32 = arith.constant 0 : i32
    %c0_i32_0 = arith.constant 0 : i32
    %c0_i32_1 = arith.constant 0 : i32
    return %c0_i32, %c0_i32_0 : i32, i32
  }
  func.func @transform_2(%arg0: i32, %arg1: i32) -> (i32, i32) {
    %c0_i32 = arith.constant 0 : i32
    %c0_i32_0 = arith.constant 0 : i32
    %c0_i32_1 = arith.constant 0 : i32
    return %c0_i32, %c0_i32_0 : i32, i32
  }
  func.func @transform_3(%arg0: i32, %arg1: i32) -> (i32, i32, i32) {
    %c0_i32 = arith.constant 0 : i32
    %c0_i32_0 = arith.constant 0 : i32
    return %arg0, %c0_i32, %arg1 : i32, i32, i32
  }
}

</mosaic_0001>

<bundles_post_ra>
// kernel: tpu_custom_call.1
= control target key start
LH: loop header
LB: loop body
LE: loop exit
PB: predicated region body
PF: predicated region fallthrough
CT: control target
= control target key end

     0   :  { %8 = vsyncpa [#allocation3], 0  ;;  %s993_s0 = inlined_call_operand.vmem [shape: bf16[2,64,128], index: 0, kind: input, shape index: {}]   ;;  %s994_s1 = inlined_call_operand.vmem [shape: bf16[80,64], index: 1, kind: input, shape index: {}]   ;;  %s995_s2 = inlined_call_operand.vmem [shape: bf16[16,40], index: 2, kind: input, shape index: {}]   ;;  %s996_s3 = inlined_call_operand.hbm [shape: f32[2,16,128], index: 3, kind: output, shape index: {}]  }
   0x1   :  { %10 = vsyncpa [#allocation3 + $0x1], 0  ;;  %s829_s12 = smov 0   ;;  %s831_s13 = smov 0  }
   0x2   :  { %s833_s14 = smov 0   ;;  %s835_s15 = smov 0  }
   0x3   :  { %s837_s16 = smov 0   ;;  %s839_s17 = smov 0  }
   0x4 LB: > { %s555_s18 = sadd.s32 4294967295, %s802_s17   ;;  %s556_s19 = sadd.s32 4294967294, %s802_s17   ;;  %s802_s17 = sphi %s839_s17, %s16_s17   ;;  %s798_s16 = sphi %s837_s16, %s1003_s16   ;;  %s794_s15 = sphi %s835_s15, %s1002_s15   ;;  %s790_s14 = sphi %s833_s14, %s1001_s14   ;;  %s786_s13 = sphi %s831_s13, %s1000_s13   ;;  %s782_s12 = sphi %s829_s12, %s999_s12  }
   0x5   : > { %s28_s20 = sadd.s32 1, %s798_s16  ;;  %s107_s21 = sadd.s32 1, %s790_s14 }
   0x6   : > { %p30_p0 = scmp.ge.s32.totalorder %s28_s20, 2  ;;  %p117_p1 = scmp.ne.s32.totalorder %s790_s14, %s786_s13 }
   0x7   : > { %p118_p2 = scmp.eq.s32.totalorder %s555_s18, 1  ;;  %p123_p3 = scmp.ne.s32.totalorder %s786_s13, %s782_s12 }
   0x8   : > { %s1005_s20 = smov (%p30_p0, %s28_s20), 0  ;;  %p124_p5 = scmp.eq.s32.totalorder %s556_s19, 1 }
   0x9   : > { %p869_p4 = por %p118_p2, %p117_p1  ;;  %s102_s23 = ssub.s32 %s798_s16, %s1005_s20 }
   0xa   : > { %p559_p6 = scmp.ge.s32.totalorder %s802_s17, 1  ;;  %p105_p7 = scmp.eq.s32.totalorder %s102_s23, 0 }
   0xb   : > { %p876_p8 = por %p124_p5, %p123_p3  ;;  %p159_p9 = scmp.lt.s32.totalorder %s802_s17, 3 }
   0xc   : > { %s882_s25 = scalar_select %p105_p7, %s790_s14, %s107_s21  }
   0xd   : > { %p160_p10 = pnand %p559_p6, %p159_p9 }
   0xe   : > { %p186_p11 = scmp.lt.s32.totalorder (!%p160_p10), %s794_s15, 1  ;;  %v804_v0 = vmov (!%p160_p10), 0.0   ;;  %vm805_vm0 = vmmov (!%p160_p10), 0   ;;  %v708_v5 = vld [vmem:[%s994_s1] sm:$0xff] (!%p160_p10)   ;;  %v709_v6 = vld [vmem:[%s994_s1 + $0x18] sm:$0xff] (!%p160_p10)   ;;  %vm262_vm1 = vcmask (!%p160_p10), 523264  }
   0xf   : > { %163 = sbr.rel (%p160_p10) target bundleno = 533 (0x215), region = 32  ;;  %599 = vmatprep.subr.bf16.mxu0 (!%p160_p10), %v804_v0  ;;  %637 = vmatprep.subr.bf16.mxu1 (!%p160_p10), %v804_v0  ;;  %v710_v7 = vld [vmem:[%s994_s1 + $0x8] sm:$0xff] (!%p160_p10)   ;;  %v711_v8 = vld [vmem:[%s994_s1 + $0x20] sm:$0xff] (!%p160_p10)   ;;  %v712_v9 = vld [vmem:[%s994_s1 + $0x10] sm:$0xff] (!%p160_p10)   ;;  %vm415_vm12 = vcmask (!%p160_p10), 1043456   ;;  %vm411_vm13 = vcmask (!%p160_p10), 326656  }
  0x10   : > { %607 = vmatprep.mubr.msk.bf16.mxu0 (!%p160_p10), %vm805_vm0, %v804_v0  ;;  %619 = vmatprep.mubr.msk.bf16.mxu1 (!%p160_p10), %vm805_vm0, %v804_v0 }
  0x16   : > { %s187_s26 = scalar_select %p186_p11, %s794_s15, 1 }
  0x18   : > { %s584_s27 = sshll.u32 %s187_s26, 5  ;;  %s183_s26 = sand.u32 1, %s786_s13  }
  0x19   : > { %s193_s30 = scalar_lea.vmem %s993_s0, %s584_s27  ;;  %s560_s27 = sshll.u32 %s183_s26, 4 }
  0x1a   : > { %v704_v1 = vld [vmem:[%s193_s30] sm:$0xff]   ;;  %v705_v2 = vld [vmem:[%s193_s30 + $0x8] sm:$0xff]   ;;  %v706_v3 = vld [vmem:[%s193_s30 + $0x10] sm:$0xff]   ;;  %s185_s28 = scalar_lea.vmem [#allocation2], %s560_s27  ;;  %s947_s7 = scalar_lea.sflag [#allocation3], %s183_s26 }
  0x1b   : > { %600 = vmatpush3.bf16.msra.mxu0 %v704_v1  ;;  %641 = vmatpush3.bf16.msra.mxu1 %v704_v1  ;;  %v707_v4 = vld [vmem:[%s193_s30 + $0x18] sm:$0xff]   ;;  %s477_s29 = sshll.u32 %s185_s28, 4  ;;  %s585_s30 = sshll.u32 %s794_s15, 8  ;;  %s940_s29 = int_to_ptr.vmem [resolvable:$true] %s477_s29 }
  0x1c   : > { %601 = vmatprep.subr.bf16.mxu0 %v804_v0  ;;  %638 = vmatprep.subr.bf16.mxu1 %v804_v0  ;;  %s945_s6 = scalar_lea.hbm %s996_s3, %s585_s30  ;;  %s724_s8 = scalar_lea.vmem %s940_s29, 256 }
  0x1d   : > { %p725_p12 = scmp.ne.s32.totalorder %s940_s29, %s724_s8  ;;  %s806_s15 = smov [#allocation2]  }
  0x1e   : > { %s728_s9 = sshll.u32 %s806_s15, 4  ;;  %s729_s9 = int_to_ptr.vmem [resolvable:$false] %s728_s9 }
  0x1f   : > { %602 = vmatpush3.bf16.msra.mxu0 %v705_v2  ;;  %642 = vmatpush3.bf16.msra.mxu1 %v705_v2  ;;  %p726_p13 = pnand %p725_p12, %p869_p4  ;;  %s730_s10 = scalar_lea.vmem %s729_s9, 512 }
  0x20   : > { %603 = vmatprep.subr.bf16.mxu0 %v804_v0  ;;  %639 = vmatprep.subr.bf16.mxu1 %v804_v0  ;;  %p731_p1 = scmp.lt.s32.totalorder %s940_s29, %s729_s9  ;;  %p732_p2 = scmp.lt.s32.totalorder %s730_s10, %s724_s8 }
  0x21   : > { %p727_p0 = pneg %p726_p13 }
  0x22   : > { %p733_p3 = por %p732_p2, %p731_p1 }
  0x23   : > { %604 = vmatpush3.bf16.msra.mxu0 %v706_v3  ;;  %643 = vmatpush3.bf16.msra.mxu1 %v706_v3 }
  0x24   : > { %605 = vmatprep.subr.bf16.mxu0 %v804_v0  ;;  %640 = vmatprep.subr.bf16.mxu1 %v804_v0  ;;  %p734_p5 = pnand %p733_p3, %p727_p0 }
  0x27   : > { %606 = vmatpush3.bf16.msra.mxu0 %v707_v4  ;;  %644 = vmatpush3.bf16.msra.mxu1 %v707_v4 }
  0x28   : > { %627 = vmatprep.subr.bf16.mxu1 %v804_v0 }
  0x2a   : > { %608 = vmatmul.mubr.msk.bf16.vlgmr.msra.gmra.mrb[0].mxu0 %vm262_vm1, %v708_v5  ;;  %620 = vmatmul.mubr.msk.bf16.vlgmr.msra.gmra.mrb[0].mxu1 %vm262_vm1, %v709_v6 }
  0x2b   : > { %611 = vmatprep.mubr.msk.bf16.mxu0 %vm805_vm0, %v804_v0  ;;  %623 = vmatprep.mubr.msk.bf16.mxu1 %vm805_vm0, %v804_v0 }
  0x32   : > { %612 = vmatmul.mubr.msk.bf16.gmra.mrb[4].mxu0 %vm262_vm1, %v710_v7  ;;  %624 = vmatmul.mubr.msk.bf16.gmra.mrb[4].mxu1 %vm262_vm1, %v711_v8 }
  0x33   : > { %615 = vmatprep.mubr.msk.bf16.mxu0 %vm805_vm0, %v804_v0  ;;  %633 = vmatprep.mubr.msk.bf16.mxu1 %vm805_vm0, %v804_v0 }
  0x3a   : > { %616 = vmatmul.mubr.msk.bf16.gmra.mrb[8].mxu0 %vm262_vm1, %v712_v9 }
  0xfd   : > { %v312_v10 = vpop.f32.mrb[0].mxu0  ;;  %v336_v11 = vpop.f32.mrb[0].mxu1 }
  0xfe   : > { %v609_v12 = vpop.f32.mrb[1].mxu0  ;;  %v357_v13 = vmul.f32 %v336_v11, %v336_v11  ;;  %v621_v14 = vpop.f32.mrb[1].mxu1  ;;  %v351_v40 = vmul.f32 %v312_v10, %v312_v10  ;;  %v713_v11 = vld [vmem:[%s995_s2] sm:$0xff]  }
  0xff   : > { %v315_v15 = vpop.f32.mrb[2].mxu0  ;;  %v339_v16 = vpop.f32.mrb[2].mxu1 }
 0x100   : > { %v352_v17 = vmul.f32 %v315_v15, %v315_v15  ;;  %v610_v18 = vpop.f32.mrb[3].mxu0  ;;  %v622_v19 = vpop.f32.mrb[3].mxu1  ;;  %v358_v21 = vmul.f32 %v339_v16, %v339_v16 }
 0x102   : > { %v925_v20 = vadd.f32 %v357_v13, %v352_v17 }
 0x104   : > { %vm375_vm6 = vcmp.eq.f32.partialorder %v925_v20, inf  ;;  %v378_v1 = vand.u32 2147483648, %v925_v20  ;;  %vm377_vm9 = vcmp.eq.f32.partialorder %v925_v20, 0.0 }
 0x105   : > { %v320_v22 = vpop.f32.mrb[4].mxu0  ;;  %v344_v23 = vpop.f32.mrb[4].mxu1 }
 0x106   : > { %v353_v24 = vmul.f32 %v320_v22, %v320_v22  ;;  %v613_v25 = vpop.f32.mrb[5].mxu0  ;;  %v359_v26 = vmul.f32 %v344_v23, %v344_v23  ;;  %v625_v27 = vpop.f32.mrb[5].mxu1 }
 0x107   : > { %v323_v28 = vpop.f32.mrb[6].mxu0  ;;  %v347_v29 = vpop.f32.mrb[6].mxu1 }
 0x108   : > { %v363_v30 = vadd.f32 %v358_v21, %v353_v24  ;;  %v354_v31 = vmul.f32 %v323_v28, %v323_v28  ;;  %v614_v32 = vpop.f32.mrb[7].mxu0  ;;  %v626_v33 = vpop.f32.mrb[7].mxu1  ;;  %v360_v35 = vmul.f32 %v347_v29, %v347_v29 }
 0x10a   : > { %714 = vrsqrt.f32 %v363_v30  ;;  %v364_v34 = vadd.f32 %v359_v26, %v354_v31  ;;  %vm382_vm2 = vcmp.eq.f32.partialorder %v363_v30, inf  ;;  %v385_v51 = vand.u32 2147483648, %v363_v30 }
 0x10b   : > { %vm384_vm4 = vcmp.eq.f32.partialorder %v363_v30, 0.0 }
 0x10c   : > { %716 = vrsqrt.f32 %v364_v34  ;;  %vm389_vm3 = vcmp.eq.f32.partialorder %v364_v34, inf  ;;  %v392_v52 = vand.u32 2147483648, %v364_v34  ;;  %vm391_vm5 = vcmp.eq.f32.partialorder %v364_v34, 0.0 }
 0x10d   : > { %v328_v36 = vpop.f32.mrb[8].mxu0  ;;  %718 = vrsqrt.f32 %v925_v20 }
 0x10e   : > { %v355_v37 = vmul.f32 %v328_v36, %v328_v36  ;;  %v617_v38 = vpop.f32.mrb[9].mxu0 }
 0x10f   : > { %v331_v39 = vpop.f32.mrb[10].mxu0 }
 0x110   : > { %v365_v41 = vadd.f32 %v360_v35, %v355_v37  ;;  %v356_v42 = vmul.f32 %v331_v39, %v331_v39  ;;  %v618_v43 = vpop.f32.mrb[11].mxu0 }
 0x112   : > { %720 = vrsqrt.f32 %v365_v41  ;;  %v361_v44 = vadd.f32 %v356_v42, %v351_v40  ;;  %vm396_vm10 = vcmp.eq.f32.partialorder %v365_v41, inf  ;;  %v399_v7 = vand.u32 2147483648, %v365_v41 }
 0x113   : > { %vm398_vm11 = vcmp.eq.f32.partialorder %v365_v41, 0.0 }
 0x114   : > { %v715_v45 = vpop.eup %714  ;;  %722 = vrsqrt.f32 %v361_v44  ;;  %vm368_vm7 = vcmp.eq.f32.partialorder %v361_v44, inf  ;;  %v371_v63 = vand.u32 2147483648, %v361_v44  ;;  %vm370_vm8 = vcmp.eq.f32.partialorder %v361_v44, 0.0 }
 0x115   : > { %v381_v46 = vmul.f32 %v715_v45, %v363_v30 }
 0x116   : > { %v717_v47 = vpop.eup %716 }
 0x117   : > { %v383_v48 = vsel %vm382_vm2, %v363_v30, %v381_v46  ;;  %v388_v49 = vmul.f32 %v717_v47, %v364_v34  ;;  %v719_v50 = vpop.eup %718 }
 0x118   : > { %v386_v54 = vsel %vm384_vm4, %v385_v51, %v383_v48  ;;  %v374_v56 = vmul.f32 %v719_v50, %v925_v20 }
 0x119   : > { %v390_v53 = vsel %vm389_vm3, %v364_v34, %v388_v49 }
 0x11a   : > { %v393_v55 = vsel %vm391_vm5, %v392_v52, %v390_v53  ;;  %v376_v62 = vsel %vm375_vm6, %v925_v20, %v374_v56 }
 0x11b   : > { %v404_v57 = vpack.c.bf16 %v393_v55, %v386_v54  ;;  %v379_v4 = vsel %vm377_vm9, %v378_v1, %v376_v62 }
 0x11c   : > { %v721_v58 = vpop.eup %720 }
 0x11d   : > { %v395_v60 = vmul.f32 %v721_v58, %v365_v41 }
 0x11e   : > { %v723_v59 = vpop.eup %722 }
 0x11f   : > { %v367_v61 = vmul.f32 %v723_v59, %v361_v44  ;;  %v397_v5 = vsel %vm396_vm10, %v365_v41, %v395_v60 }
 0x120   : > { %v400_v8 = vsel %vm398_vm11, %v399_v7, %v397_v5 }
 0x121   : > { %v369_v2 = vsel %vm368_vm7, %v361_v44, %v367_v61  ;;  %v405_v9 = vpack.c.bf16 %v400_v8, %v400_v8 }
 0x122   : > { %v372_v3 = vsel %vm370_vm8, %v371_v63, %v369_v2 }
 0x123   : > { %v403_v6 = vpack.c.bf16 %v379_v4, %v372_v3  ;;  %v417_v10 = vsel %vm415_vm12, %v405_v9, 0 }
 0x125   : > { %628 = vmatpush3.bf16.msra.mxu1 %v403_v6 }
 0x126   : > { %629 = vmatprep.subr.bf16.mxu1 %v804_v0 }
 0x129   : > { %630 = vmatpush3.bf16.msra.mxu1 %v404_v57 }
 0x12a   : > { %631 = vmatprep.subr.bf16.mxu1 %v804_v0 }
 0x12d   : > { %632 = vmatpush3.bf16.msra.mxu1 %v417_v10 }
 0x130   : > { %634 = vmatmul.mubr.msk.bf16.vlgmr.msra.gmra.mrb[8].mxu1 %vm411_vm13, %v713_v11 }
 0x203   : > { %v453_v12 = vpop.f32.mrb[8].mxu1 }
 0x204   : > { %460 = vst [vmem:[%s185_s28] sm:$0xff] %v453_v12  ;;  %v635_v0 = vpop.f32.mrb[9].mxu1 }
 0x205   : > { %v456_v13 = vpop.f32.mrb[10].mxu1 }
 0x206   : > { %461 = vst [vmem:[%s185_s28 + $0x8] sm:$0xff] %v456_v13  ;;  %v636_v14 = vpop.f32.mrb[11].mxu1 }
 0x207   : > { %737 = shalt.err (!%p734_p5)
}
 0x208   : > { %s738_s11 = scalar_lea.hbm %s945_s6, 256  ;;  %s742_s21 = scalar_lea.hbm %s996_s3, 512 }
 0x209   : > { %p739_p6 = scmp.ne.s32.totalorder %s945_s6, %s738_s11  ;;  %p743_p10 = scmp.lt.u32.totalorder %s945_s6, %s996_s3 }
 0x20a   : > { %p744_p11 = scmp.lt.u32.totalorder %s742_s21, %s738_s11  ;;  %p746_p13 = scmp.lt.u32.totalorder %s738_s11, %s945_s6 }
 0x20b   : > { %p740_p7 = pnand %p739_p6, %p869_p4 }
 0x20c   : > { %p745_p12 = por %p744_p11, %p743_p10 }
 0x20d   : > { %p741_p9 = pneg %p740_p7 }
 0x20e   : > { %p747_p0 = por %p746_p13, %p745_p12 }
 0x210   : > { %p748_p1 = pnand %p747_p0, %p741_p9 }
 0x212   : > { %751 = shalt.err (!%p748_p1)
}
 0x213   : > { %s807_s27 = smov 128   ;;  %s808_s28 = smov 8  }
 0x214   : > { %645 = dma.vmem_to_hbm [thread:$0]  (%p869_p4), %s940_s29, 256, %s945_s6, %s947_s7, %s807_s27, %s807_s27, %s808_s28  }
 0x215 PF: > { %p651_p2 = scmp.ge.s32.totalorder %s802_s17, 2  ;;  %s492_s30 = sand.u32 1, %s782_s12  }
 0x216   : > { %s493_s4 = scalar_lea.sflag [#allocation3], %s492_s30 }
 0x217   : > { %p648_p3 = pnand %p651_p2, %p876_p8 }
 0x219   : > { %777 = dma.done.wait (!%p648_p3), %s493_s4, 256  }
 0x21a   : > { %779 = vsyncadd (!%p648_p3), %s493_s4, 4294967040  ;;  %s16_s17 = sadd.s32 1, %s802_s17   ;;  %s999_s12 = smov %s786_s13 }
 0x21b   : > { %p13_p5 = scmp.ge.s32.totalorder %s16_s17, 4   ;;  %s1000_s13 = smov %s790_s14 }
 0x21c   : > { %s1001_s14 = smov %s882_s25  ;;  %s1002_s15 = smov %s798_s16 }
 0x21d   : > { %s1003_s16 = smov %s1005_s20  ;;  %15 = sbr.rel (!%p13_p5) target bundleno = 4 (0x4), region = 67 }
 0x224   :  { %498 = vsyncpa [#allocation3], 1 }
 0x225   :  { %500 = vsyncpa [#allocation3 + $0x1], 1 }

// kernel: tpu_custom_call.1
= control target key start
LH: loop header
LB: loop body
LE: loop exit
PB: predicated region body
PF: predicated region fallthrough
CT: control target
= control target key end

     0   :  { %8 = vsyncpa [#allocation3], 0  ;;  %s993_s0 = inlined_call_operand.vmem [shape: bf16[2,64,128], index: 0, kind: input, shape index: {}]   ;;  %s994_s1 = inlined_call_operand.vmem [shape: bf16[80,64], index: 1, kind: input, shape index: {}]   ;;  %s995_s2 = inlined_call_operand.vmem [shape: bf16[16,40], index: 2, kind: input, shape index: {}]   ;;  %s996_s3 = inlined_call_operand.hbm [shape: f32[2,16,128], index: 3, kind: output, shape index: {}]  }
   0x1   :  { %10 = vsyncpa [#allocation3 + $0x1], 0  ;;  %s829_s12 = smov 0   ;;  %s831_s13 = smov 0  }
   0x2   :  { %s833_s14 = smov 0   ;;  %s835_s15 = smov 0  }
   0x3   :  { %s837_s16 = smov 0   ;;  %s839_s17 = smov 0  }
   0x4 LB: > { %s555_s18 = sadd.s32 4294967295, %s802_s17   ;;  %s556_s19 = sadd.s32 4294967294, %s802_s17   ;;  %s802_s17 = sphi %s839_s17, %s16_s17   ;;  %s798_s16 = sphi %s837_s16, %s1003_s16   ;;  %s794_s15 = sphi %s835_s15, %s1002_s15   ;;  %s790_s14 = sphi %s833_s14, %s1001_s14   ;;  %s786_s13 = sphi %s831_s13, %s1000_s13   ;;  %s782_s12 = sphi %s829_s12, %s999_s12  }
   0x5   : > { %s28_s20 = sadd.s32 1, %s798_s16  ;;  %s107_s21 = sadd.s32 1, %s790_s14 }
   0x6   : > { %p30_p0 = scmp.ge.s32.totalorder %s28_s20, 2  ;;  %p117_p1 = scmp.ne.s32.totalorder %s790_s14, %s786_s13 }
   0x7   : > { %p118_p2 = scmp.eq.s32.totalorder %s555_s18, 1  ;;  %p123_p3 = scmp.ne.s32.totalorder %s786_s13, %s782_s12 }
   0x8   : > { %s1005_s20 = smov (%p30_p0, %s28_s20), 0  ;;  %p124_p5 = scmp.eq.s32.totalorder %s556_s19, 1 }
   0x9   : > { %p869_p4 = por %p118_p2, %p117_p1  ;;  %s102_s23 = ssub.s32 %s798_s16, %s1005_s20 }
   0xa   : > { %p559_p6 = scmp.ge.s32.totalorder %s802_s17, 1  ;;  %p105_p7 = scmp.eq.s32.totalorder %s102_s23, 0 }
   0xb   : > { %p876_p8 = por %p124_p5, %p123_p3  ;;  %p159_p9 = scmp.lt.s32.totalorder %s802_s17, 3 }
   0xc   : > { %s882_s25 = scalar_select %p105_p7, %s790_s14, %s107_s21  }
   0xd   : > { %p160_p10 = pnand %p559_p6, %p159_p9 }
   0xe   : > { %p186_p11 = scmp.lt.s32.totalorder (!%p160_p10), %s794_s15, 1  ;;  %v804_v0 = vmov (!%p160_p10), 0.0   ;;  %vm805_vm0 = vmmov (!%p160_p10), 0   ;;  %v708_v5 = vld [vmem:[%s994_s1] sm:$0xff] (!%p160_p10)   ;;  %v709_v6 = vld [vmem:[%s994_s1 + $0x18] sm:$0xff] (!%p160_p10)   ;;  %vm262_vm1 = vcmask (!%p160_p10), 523264  }
   0xf   : > { %163 = sbr.rel (%p160_p10) target bundleno = 533 (0x215), region = 32  ;;  %599 = vmatprep.subr.bf16.mxu0 (!%p160_p10), %v804_v0  ;;  %637 = vmatprep.subr.bf16.mxu1 (!%p160_p10), %v804_v0  ;;  %v710_v7 = vld [vmem:[%s994_s1 + $0x8] sm:$0xff] (!%p160_p10)   ;;  %v711_v8 = vld [vmem:[%s994_s1 + $0x20] sm:$0xff] (!%p160_p10)   ;;  %v712_v9 = vld [vmem:[%s994_s1 + $0x10] sm:$0xff] (!%p160_p10)   ;;  %vm415_vm12 = vcmask (!%p160_p10), 1043456   ;;  %vm411_vm13 = vcmask (!%p160_p10), 326656  }
  0x10   : > { %607 = vmatprep.mubr.msk.bf16.mxu0 (!%p160_p10), %vm805_vm0, %v804_v0  ;;  %619 = vmatprep.mubr.msk.bf16.mxu1 (!%p160_p10), %vm805_vm0, %v804_v0 }
  0x16   : > { %s187_s26 = scalar_select %p186_p11, %s794_s15, 1 }
  0x18   : > { %s584_s27 = sshll.u32 %s187_s26, 5  ;;  %s183_s26 = sand.u32 1, %s786_s13  }
  0x19   : > { %s193_s30 = scalar_lea.vmem %s993_s0, %s584_s27  ;;  %s560_s27 = sshll.u32 %s183_s26, 4 }
  0x1a   : > { %v704_v1 = vld [vmem:[%s193_s30] sm:$0xff]   ;;  %v705_v2 = vld [vmem:[%s193_s30 + $0x8] sm:$0xff]   ;;  %v706_v3 = vld [vmem:[%s193_s30 + $0x10] sm:$0xff]   ;;  %s185_s28 = scalar_lea.vmem [#allocation2], %s560_s27  ;;  %s947_s7 = scalar_lea.sflag [#allocation3], %s183_s26 }
  0x1b   : > { %600 = vmatpush3.bf16.msra.mxu0 %v704_v1  ;;  %641 = vmatpush3.bf16.msra.mxu1 %v704_v1  ;;  %v707_v4 = vld [vmem:[%s193_s30 + $0x18] sm:$0xff]   ;;  %s477_s29 = sshll.u32 %s185_s28, 4  ;;  %s585_s30 = sshll.u32 %s794_s15, 8  ;;  %s940_s29 = int_to_ptr.vmem [resolvable:$true] %s477_s29 }
  0x1c   : > { %601 = vmatprep.subr.bf16.mxu0 %v804_v0  ;;  %638 = vmatprep.subr.bf16.mxu1 %v804_v0  ;;  %s945_s6 = scalar_lea.hbm %s996_s3, %s585_s30  ;;  %s724_s8 = scalar_lea.vmem %s940_s29, 256 }
  0x1d   : > { %p725_p12 = scmp.ne.s32.totalorder %s940_s29, %s724_s8  ;;  %s806_s15 = smov [#allocation2]  }
  0x1e   : > { %s728_s9 = sshll.u32 %s806_s15, 4  ;;  %s729_s9 = int_to_ptr.vmem [resolvable:$false] %s728_s9 }
  0x1f   : > { %602 = vmatpush3.bf16.msra.mxu0 %v705_v2  ;;  %642 = vmatpush3.bf16.msra.mxu1 %v705_v2  ;;  %p726_p13 = pnand %p725_p12, %p869_p4  ;;  %s730_s10 = scalar_lea.vmem %s729_s9, 512 }
  0x20   : > { %603 = vmatprep.subr.bf16.mxu0 %v804_v0  ;;  %639 = vmatprep.subr.bf16.mxu1 %v804_v0  ;;  %p731_p1 = scmp.lt.s32.totalorder %s940_s29, %s729_s9  ;;  %p732_p2 = scmp.lt.s32.totalorder %s730_s10, %s724_s8 }
  0x21   : > { %p727_p0 = pneg %p726_p13 }
  0x22   : > { %p733_p3 = por %p732_p2, %p731_p1 }
  0x23   : > { %604 = vmatpush3.bf16.msra.mxu0 %v706_v3  ;;  %643 = vmatpush3.bf16.msra.mxu1 %v706_v3 }
  0x24   : > { %605 = vmatprep.subr.bf16.mxu0 %v804_v0  ;;  %640 = vmatprep.subr.bf16.mxu1 %v804_v0  ;;  %p734_p5 = pnand %p733_p3, %p727_p0 }
  0x27   : > { %606 = vmatpush3.bf16.msra.mxu0 %v707_v4  ;;  %644 = vmatpush3.bf16.msra.mxu1 %v707_v4 }
  0x28   : > { %627 = vmatprep.subr.bf16.mxu1 %v804_v0 }
  0x2a   : > { %608 = vmatmul.mubr.msk.bf16.vlgmr.msra.gmra.mrb[0].mxu0 %vm262_vm1, %v708_v5  ;;  %620 = vmatmul.mubr.msk.bf16.vlgmr.msra.gmra.mrb[0].mxu1 %vm262_vm1, %v709_v6 }
  0x2b   : > { %611 = vmatprep.mubr.msk.bf16.mxu0 %vm805_vm0, %v804_v0  ;;  %623 = vmatprep.mubr.msk.bf16.mxu1 %vm805_vm0, %v804_v0 }
  0x32   : > { %612 = vmatmul.mubr.msk.bf16.gmra.mrb[4].mxu0 %vm262_vm1, %v710_v7  ;;  %624 = vmatmul.mubr.msk.bf16.gmra.mrb[4].mxu1 %vm262_vm1, %v711_v8 }
  0x33   : > { %615 = vmatprep.mubr.msk.bf16.mxu0 %vm805_vm0, %v804_v0  ;;  %633 = vmatprep.mubr.msk.bf16.mxu1 %vm805_vm0, %v804_v0 }
  0x3a   : > { %616 = vmatmul.mubr.msk.bf16.gmra.mrb[8].mxu0 %vm262_vm1, %v712_v9 }
  0xfd   : > { %v312_v10 = vpop.f32.mrb[0].mxu0  ;;  %v336_v11 = vpop.f32.mrb[0].mxu1 }
  0xfe   : > { %v609_v12 = vpop.f32.mrb[1].mxu0  ;;  %v357_v13 = vmul.f32 %v336_v11, %v336_v11  ;;  %v621_v14 = vpop.f32.mrb[1].mxu1  ;;  %v351_v40 = vmul.f32 %v312_v10, %v312_v10  ;;  %v713_v11 = vld [vmem:[%s995_s2] sm:$0xff]  }
  0xff   : > { %v315_v15 = vpop.f32.mrb[2].mxu0  ;;  %v339_v16 = vpop.f32.mrb[2].mxu1 }
 0x100   : > { %v352_v17 = vmul.f32 %v315_v15, %v315_v15  ;;  %v610_v18 = vpop.f32.mrb[3].mxu0  ;;  %v622_v19 = vpop.f32.mrb[3].mxu1  ;;  %v358_v21 = vmul.f32 %v339_v16, %v339_v16 }
 0x102   : > { %v925_v20 = vadd.f32 %v357_v13, %v352_v17 }
 0x104   : > { %vm375_vm6 = vcmp.eq.f32.partialorder %v925_v20, inf  ;;  %v378_v1 = vand.u32 2147483648, %v925_v20  ;;  %vm377_vm9 = vcmp.eq.f32.partialorder %v925_v20, 0.0 }
 0x105   : > { %v320_v22 = vpop.f32.mrb[4].mxu0  ;;  %v344_v23 = vpop.f32.mrb[4].mxu1 }
 0x106   : > { %v353_v24 = vmul.f32 %v320_v22, %v320_v22  ;;  %v613_v25 = vpop.f32.mrb[5].mxu0  ;;  %v359_v26 = vmul.f32 %v344_v23, %v344_v23  ;;  %v625_v27 = vpop.f32.mrb[5].mxu1 }
 0x107   : > { %v323_v28 = vpop.f32.mrb[6].mxu0  ;;  %v347_v29 = vpop.f32.mrb[6].mxu1 }
 0x108   : > { %v363_v30 = vadd.f32 %v358_v21, %v353_v24  ;;  %v354_v31 = vmul.f32 %v323_v28, %v323_v28  ;;  %v614_v32 = vpop.f32.mrb[7].mxu0  ;;  %v626_v33 = vpop.f32.mrb[7].mxu1  ;;  %v360_v35 = vmul.f32 %v347_v29, %v347_v29 }
 0x10a   : > { %714 = vrsqrt.f32 %v363_v30  ;;  %v364_v34 = vadd.f32 %v359_v26, %v354_v31  ;;  %vm382_vm2 = vcmp.eq.f32.partialorder %v363_v30, inf  ;;  %v385_v51 = vand.u32 2147483648, %v363_v30 }
 0x10b   : > { %vm384_vm4 = vcmp.eq.f32.partialorder %v363_v30, 0.0 }
 0x10c   : > { %716 = vrsqrt.f32 %v364_v34  ;;  %vm389_vm3 = vcmp.eq.f32.partialorder %v364_v34, inf  ;;  %v392_v52 = vand.u32 2147483648, %v364_v34  ;;  %vm391_vm5 = vcmp.eq.f32.partialorder %v364_v34, 0.0 }
 0x10d   : > { %v328_v36 = vpop.f32.mrb[8].mxu0  ;;  %718 = vrsqrt.f32 %v925_v20 }
 0x10e   : > { %v355_v37 = vmul.f32 %v328_v36, %v328_v36  ;;  %v617_v38 = vpop.f32.mrb[9].mxu0 }
 0x10f   : > { %v331_v39 = vpop.f32.mrb[10].mxu0 }
 0x110   : > { %v365_v41 = vadd.f32 %v360_v35, %v355_v37  ;;  %v356_v42 = vmul.f32 %v331_v39, %v331_v39  ;;  %v618_v43 = vpop.f32.mrb[11].mxu0 }
 0x112   : > { %720 = vrsqrt.f32 %v365_v41  ;;  %v361_v44 = vadd.f32 %v356_v42, %v351_v40  ;;  %vm396_vm10 = vcmp.eq.f32.partialorder %v365_v41, inf  ;;  %v399_v7 = vand.u32 2147483648, %v365_v41 }
 0x113   : > { %vm398_vm11 = vcmp.eq.f32.partialorder %v365_v41, 0.0 }
 0x114   : > { %v715_v45 = vpop.eup %714  ;;  %722 = vrsqrt.f32 %v361_v44  ;;  %vm368_vm7 = vcmp.eq.f32.partialorder %v361_v44, inf  ;;  %v371_v63 = vand.u32 2147483648, %v361_v44  ;;  %vm370_vm8 = vcmp.eq.f32.partialorder %v361_v44, 0.0 }
 0x115   : > { %v381_v46 = vmul.f32 %v715_v45, %v363_v30 }
 0x116   : > { %v717_v47 = vpop.eup %716 }
 0x117   : > { %v383_v48 = vsel %vm382_vm2, %v363_v30, %v381_v46  ;;  %v388_v49 = vmul.f32 %v717_v47, %v364_v34  ;;  %v719_v50 = vpop.eup %718 }
 0x118   : > { %v386_v54 = vsel %vm384_vm4, %v385_v51, %v383_v48  ;;  %v374_v56 = vmul.f32 %v719_v50, %v925_v20 }
 0x119   : > { %v390_v53 = vsel %vm389_vm3, %v364_v34, %v388_v49 }
 0x11a   : > { %v393_v55 = vsel %vm391_vm5, %v392_v52, %v390_v53  ;;  %v376_v62 = vsel %vm375_vm6, %v925_v20, %v374_v56 }
 0x11b   : > { %v404_v57 = vpack.c.bf16 %v393_v55, %v386_v54  ;;  %v379_v4 = vsel %vm377_vm9, %v378_v1, %v376_v62 }
 0x11c   : > { %v721_v58 = vpop.eup %720 }
 0x11d   : > { %v395_v60 = vmul.f32 %v721_v58, %v365_v41 }
 0x11e   : > { %v723_v59 = vpop.eup %722 }
 0x11f   : > { %v367_v61 = vmul.f32 %v723_v59, %v361_v44  ;;  %v397_v5 = vsel %vm396_vm10, %v365_v41, %v395_v60 }
 0x120   : > { %v400_v8 = vsel %vm398_vm11, %v399_v7, %v397_v5 }
 0x121   : > { %v369_v2 = vsel %vm368_vm7, %v361_v44, %v367_v61  ;;  %v405_v9 = vpack.c.bf16 %v400_v8, %v400_v8 }
 0x122   : > { %v372_v3 = vsel %vm370_vm8, %v371_v63, %v369_v2 }
 0x123   : > { %v403_v6 = vpack.c.bf16 %v379_v4, %v372_v3  ;;  %v417_v10 = vsel %vm415_vm12, %v405_v9, 0 }
 0x125   : > { %628 = vmatpush3.bf16.msra.mxu1 %v403_v6 }
 0x126   : > { %629 = vmatprep.subr.bf16.mxu1 %v804_v0 }
 0x129   : > { %630 = vmatpush3.bf16.msra.mxu1 %v404_v57 }
 0x12a   : > { %631 = vmatprep.subr.bf16.mxu1 %v804_v0 }
 0x12d   : > { %632 = vmatpush3.bf16.msra.mxu1 %v417_v10 }
 0x130   : > { %634 = vmatmul.mubr.msk.bf16.vlgmr.msra.gmra.mrb[8].mxu1 %vm411_vm13, %v713_v11 }
 0x203   : > { %v453_v12 = vpop.f32.mrb[8].mxu1 }
 0x204   : > { %460 = vst [vmem:[%s185_s28] sm:$0xff] %v453_v12  ;;  %v635_v0 = vpop.f32.mrb[9].mxu1 }
 0x205   : > { %v456_v13 = vpop.f32.mrb[10].mxu1 }
 0x206   : > { %461 = vst [vmem:[%s185_s28 + $0x8] sm:$0xff] %v456_v13  ;;  %v636_v14 = vpop.f32.mrb[11].mxu1 }
 0x207   : > { %737 = shalt.err (!%p734_p5)
}
 0x208   : > { %s738_s11 = scalar_lea.hbm %s945_s6, 256  ;;  %s742_s21 = scalar_lea.hbm %s996_s3, 512 }
 0x209   : > { %p739_p6 = scmp.ne.s32.totalorder %s945_s6, %s738_s11  ;;  %p743_p10 = scmp.lt.u32.totalorder %s945_s6, %s996_s3 }
 0x20a   : > { %p744_p11 = scmp.lt.u32.totalorder %s742_s21, %s738_s11  ;;  %p746_p13 = scmp.lt.u32.totalorder %s738_s11, %s945_s6 }
 0x20b   : > { %p740_p7 = pnand %p739_p6, %p869_p4 }
 0x20c   : > { %p745_p12 = por %p744_p11, %p743_p10 }
 0x20d   : > { %p741_p9 = pneg %p740_p7 }
 0x20e   : > { %p747_p0 = por %p746_p13, %p745_p12 }
 0x210   : > { %p748_p1 = pnand %p747_p0, %p741_p9 }
 0x212   : > { %751 = shalt.err (!%p748_p1)
}
 0x213   : > { %s807_s27 = smov 128   ;;  %s808_s28 = smov 8  }
 0x214   : > { %645 = dma.vmem_to_hbm [thread:$0]  (%p869_p4), %s940_s29, 256, %s945_s6, %s947_s7, %s807_s27, %s807_s27, %s808_s28  }
 0x215 PF: > { %p651_p2 = scmp.ge.s32.totalorder %s802_s17, 2  ;;  %s492_s30 = sand.u32 1, %s782_s12  }
 0x216   : > { %s493_s4 = scalar_lea.sflag [#allocation3], %s492_s30 }
 0x217   : > { %p648_p3 = pnand %p651_p2, %p876_p8 }
 0x219   : > { %777 = dma.done.wait (!%p648_p3), %s493_s4, 256  }
 0x21a   : > { %779 = vsyncadd (!%p648_p3), %s493_s4, 4294967040  ;;  %s16_s17 = sadd.s32 1, %s802_s17   ;;  %s999_s12 = smov %s786_s13 }
 0x21b   : > { %p13_p5 = scmp.ge.s32.totalorder %s16_s17, 4   ;;  %s1000_s13 = smov %s790_s14 }
 0x21c   : > { %s1001_s14 = smov %s882_s25  ;;  %s1002_s15 = smov %s798_s16 }
 0x21d   : > { %s1003_s16 = smov %s1005_s20  ;;  %15 = sbr.rel (!%p13_p5) target bundleno = 4 (0x4), region = 67 }
 0x224   :  { %498 = vsyncpa [#allocation3], 1 }
 0x225   :  { %500 = vsyncpa [#allocation3 + $0x1], 1 }

</bundles_post_ra>
